<compile_context>
chip_gen: v7x
topology: tpu7x:2x2x1
jax: 0.10.0
libtpu: 0.0.40
codegen_flags: <defaults>
</compile_context>

<pallas_src>
import functools

import jax
import jax.numpy as jnp
from jax.experimental import pallas as pl
from jax.experimental.pallas import tpu as pltpu


# ------------------------------ Pallas kernels ------------------------------

def _conv_taps_kernel(x_ref, w_ref, b_ref, o_ref, *, offsets):
    """out = sum_t W_t @ x[:, off_t : off_t + L]  + bias   (f32 accumulate).

    x_ref: (1, Cin, Lx)        bf16/f32 flattened (padded) image
    w_ref: (T, Cout_tile, Cin) bf16/f32 per-tap weight slabs
    b_ref: (Cout_tile, 1)      f32
    o_ref: (1, Cout_tile, L)   f32, lane-dense output columns
    """
    _, tco, L = o_ref.shape
    acc = jnp.zeros((tco, L), jnp.float32)
    for t, off in enumerate(offsets):              # static unroll over taps
        xs = x_ref[0, :, pl.ds(off, L)]            # (Cin, L), static lane offset
        acc = acc + jnp.dot(w_ref[t], xs, preferred_element_type=jnp.float32)
    o_ref[0] = acc + b_ref[...]                    # fused bias, f32 output


def _gn_silu_kernel(y_ref, g_ref, b_ref, o_ref, *, num_groups, eps):
    """GroupNorm(num_groups) + SiLU over a (TB, C, HW) block, single-pass stats."""
    tb, c, hw = y_ref.shape
    cg = c // num_groups
    inv_n = 1.0 / float(cg * hw)
    for bi in range(tb):                           # static unroll (small TB)
        for g in range(num_groups):                # static unroll (G = 2)
            lo = g * cg
            xg = y_ref[bi, lo:lo + cg, :]          # (Cg, HW) f32
            mean = jnp.sum(xg) * inv_n
            var = jnp.sum(xg * xg) * inv_n - mean * mean   # biased variance
            z = (xg - mean) * jax.lax.rsqrt(var + eps)
            z = z * g_ref[lo:lo + cg, :] + b_ref[lo:lo + cg, :]
            o_ref[bi, lo:lo + cg, :] = z * jax.nn.sigmoid(z)   # SiLU


# ------------------------------ wrappers / glue ------------------------------

def conv2d_pallas(x, w, b, *, stride=1, padding=0, dilation=1,
                  mxu_dtype=jnp.bfloat16):
    """2-D conv, NCHW in / NCHW out, bias fused, f32 accumulation."""
    N, Cin, H, W = x.shape
    Cout, Cin2, kh, kw = w.shape
    assert Cin2 == Cin
    Ho = (H + 2 * padding - dilation * (kh - 1) - 1) // stride + 1
    Wo = (W + 2 * padding - dilation * (kw - 1) - 1) // stride + 1
    T = kh * kw

    # Per-tap weight slabs (T, Cout, Cin); MXU inputs narrow, accumulate in f32.
    wt = w.transpose(2, 3, 0, 1).reshape(T, Cout, Cin).astype(mxu_dtype)
    b2 = b.reshape(Cout, 1).astype(jnp.float32)

    xp = jnp.pad(x, ((0, 0), (0, 0), (padding, padding), (padding, padding)))
    Hp, Wp = H + 2 * padding, W + 2 * padding

    if stride == 1:
        # Fused path: each kernel tap is a contiguous lane slice of the
        # flattened padded image (no im2col / no KH*KW HBM inflation).
        out_w = Wp                                  # kernel computes Ho*Wp cols
        L = Ho * out_w
        tail = dilation * (kw - 1)                  # last tap reads past Hp*Wp
        xf = xp.reshape(N, Cin, Hp * Wp)
        if tail:
            xf = jnp.pad(xf, ((0, 0), (0, 0), (0, tail)))
        offsets = tuple(i * dilation * Wp + j * dilation
                        for i in range(kh) for j in range(kw))
    else:
        # General-stride fallback: pre-extract the T shifted/strided taps in JAX
        # (T-x input traffic, like im2col) but keep the lane-dense layout.
        out_w = Wo
        L = Ho * Wo
        slabs = []
        for i in range(kh):
            for j in range(kw):
                sl = xp[:, :,
                        i * dilation: i * dilation + stride * (Ho - 1) + 1: stride,
                        j * dilation: j * dilation + stride * (Wo - 1) + 1: stride]
                slabs.append(sl.reshape(N, Cin, L))
        xf = jnp.concatenate(slabs, axis=-1)
        offsets = tuple(t * L for t in range(T))

    xf = xf.astype(mxu_dtype)
    Lx = xf.shape[-1]

    # Cout tiling: weights for a Cout tile stay resident across the inner axis.
    tco = 128 if (Cout > 128 and Cout % 128 == 0) else Cout
    grid = (N, Cout // tco)

    # Explicit VMEM budget (per-step working set, double-buffered), capped well
    # under v7x's 32 MiB scoped / 64 MiB physical per-TC limit.
    itemsize = jnp.dtype(mxu_dtype).itemsize
    per_step = (Cin * Lx * itemsize + tco * L * 4
                + T * tco * Cin * itemsize + tco * 4)
    vmem_limit = int(min(32 * 1024 * 1024, max(4 * 1024 * 1024, 6 * per_step)))
    # TODO(synk): for very large images, add spatial (Ho) tiling with halo rows
    # so a single grid step never has to hold a full image in VMEM.

    cost = pl.CostEstimate(
        flops=2 * N * T * Cout * Cin * L,
        transcendentals=0,
        bytes_accessed=int(xf.size * itemsize + wt.size * itemsize
                           + b2.size * 4 + N * Cout * L * 4))

    out = pl.pallas_call(
        functools.partial(_conv_taps_kernel, offsets=offsets),
        out_shape=jax.ShapeDtypeStruct((N, Cout, L), jnp.float32),
        grid=grid,
        in_specs=[pl.BlockSpec((1, Cin, Lx), lambda n, c: (n, 0, 0)),
                  pl.BlockSpec((T, tco, Cin), lambda n, c: (0, c, 0)),
                  pl.BlockSpec((tco, 1), lambda n, c: (c, 0))],
        out_specs=pl.BlockSpec((1, tco, L), lambda n, c: (n, c, 0)),
        compiler_params=pltpu.CompilerParams(
            dimension_semantics=("parallel", "parallel"),
            vmem_limit_bytes=vmem_limit),
        cost_estimate=cost,
    )(xf, wt, b2)

    out = out.reshape(N, Cout, Ho, out_w)
    if out_w != Wo:
        out = out[:, :, :, :Wo]        # drop padded-width garbage columns
    return out                          # NCHW, f32


def groupnorm_silu_pallas(y, gamma, beta, *, num_groups=2, eps=1e-5):
    N, C, H, W = y.shape
    HW = H * W
    yr = y.reshape(N, C, HW).astype(jnp.float32)   # conv output layout (free)
    g2 = gamma.reshape(C, 1).astype(jnp.float32)
    b2 = beta.reshape(C, 1).astype(jnp.float32)

    # Batch rows per step: amortize per-grid-step overhead (target ~512 KiB per
    # block) while keeping >= 2 steps when possible so v7x's two TCs get work.
    bytes_per_row = C * HW * 4
    tb = max(1, min((512 * 1024) // max(1, bytes_per_row), max(1, N // 2), N))
    while N % tb:
        tb -= 1

    out = pl.pallas_call(
        functools.partial(_gn_silu_kernel, num_groups=num_groups, eps=eps),
        out_shape=jax.ShapeDtypeStruct((N, C, HW), jnp.float32),
        grid=(N // tb,),
        in_specs=[pl.BlockSpec((tb, C, HW), lambda n: (n, 0, 0)),
                  pl.BlockSpec((C, 1), lambda n: (0, 0)),
                  pl.BlockSpec((C, 1), lambda n: (0, 0))],
        out_specs=pl.BlockSpec((tb, C, HW), lambda n: (n, 0, 0)),
        compiler_params=pltpu.CompilerParams(
            dimension_semantics=("parallel",)),
    )(yr, g2, b2)
    return out.reshape(N, C, H, W)


class BasicConv2dPallas:
    """Pallas port of BasicConv2d (upsampling=False branch)."""

    def __init__(self, in_channels, out_channels, key, kernel_size=3,
                 stride=1, padding=0, dilation=1, act_norm=False,
                 mxu_dtype=jnp.bfloat16):
        self.stride, self.padding, self.dilation = stride, padding, dilation
        self.act_norm = act_norm
        self.mxu_dtype = mxu_dtype
        # _init_weights: trunc_normal_(std=0.02), bias = 0.
        self.w = 0.02 * jax.random.truncated_normal(
            key, -2.0, 2.0,
            (out_channels, in_channels, kernel_size, kernel_size),
            dtype=jnp.float32)
        self.b = jnp.zeros((out_channels,), jnp.float32)
        # GroupNorm(2, out_channels) affine params (PyTorch defaults: 1 / 0).
        self.gn_gamma = jnp.ones((out_channels,), jnp.float32)
        self.gn_beta = jnp.zeros((out_channels,), jnp.float32)
        # TODO(synk): upsampling=True branch (Conv2d(out*4) + PixelShuffle(2))
        # is not wired up here.

    def __call__(self, x):
        y = conv2d_pallas(x, self.w, self.b, stride=self.stride,
                          padding=self.padding, dilation=self.dilation,
                          mxu_dtype=self.mxu_dtype)
        if self.act_norm:
            y = groupnorm_silu_pallas(y, self.gn_gamma, self.gn_beta,
                                      num_groups=2, eps=1e-5)
        return y


# ---------------------------- pure-JAX reference -----------------------------

def _reference(x, w, b, gamma, beta, *, stride, padding, dilation, act_norm,
               mxu_dtype=jnp.float32):
    # Matches the kernel's precision contract: conv inputs rounded to mxu_dtype,
    # accumulation and all elementwise / GroupNorm math in f32.
    xq = x.astype(mxu_dtype).astype(jnp.float32)
    wq = w.astype(mxu_dtype).astype(jnp.float32)
    y = jax.lax.conv_general_dilated(
        xq, wq, window_strides=(stride, stride),
        padding=((padding, padding), (padding, padding)),
        rhs_dilation=(dilation, dilation),
        dimension_numbers=("NCHW", "OIHW", "NCHW"),
        precision=jax.lax.Precision.HIGHEST)
    y = y + b.reshape(1, -1, 1, 1)
    if act_norm:
        N, C, H, W = y.shape
        G = 2
        yr = y.reshape(N, G, C // G, H, W)
        mean = yr.mean(axis=(2, 3, 4), keepdims=True)
        var = ((yr - mean) ** 2).mean(axis=(2, 3, 4), keepdims=True)
        yn = ((yr - mean) / jnp.sqrt(var + 1e-5)).reshape(N, C, H, W)
        yn = yn * gamma.reshape(1, -1, 1, 1) + beta.reshape(1, -1, 1, 1)
        y = yn * jax.nn.sigmoid(yn)
    return y


if __name__ == "__main__":
    key = jax.random.PRNGKey(0)
    kx, kw = jax.random.split(key)
    N, Cin, H, W = 2, 4, 16, 16
    Cout = 8

    x = jax.random.normal(kx, (N, Cin, H, W), dtype=jnp.float32)
    mod = BasicConv2dPallas(Cin, Cout, kw, kernel_size=3, stride=1,
                            padding=1, dilation=1, act_norm=True)

    y = mod(x)
    jax.block_until_ready(y)
    assert y.shape == (N, Cout, H, W), y.shape

    # Tight check vs. the precision-matched reference (bf16-rounded conv inputs,
    # f32 accumulation — same contract as the kernel).
    y_ref = _reference(x, mod.w, mod.b, mod.gn_gamma, mod.gn_beta,
                       stride=1, padding=1, dilation=1, act_norm=True,
                       mxu_dtype=mod.mxu_dtype)
    assert jnp.allclose(y, y_ref, atol=1e-4, rtol=1e-4), \
        float(jnp.max(jnp.abs(y - y_ref)))

    # Loose semantic cross-check vs. the pure-f32 module (bf16 MXU inputs only
    # introduce input-quantization-level error).
    y_f32 = _reference(x, mod.w, mod.b, mod.gn_gamma, mod.gn_beta,
                       stride=1, padding=1, dilation=1, act_norm=True,
                       mxu_dtype=jnp.float32)
    assert jnp.allclose(y, y_f32, atol=5e-2, rtol=5e-2), \
        float(jnp.max(jnp.abs(y - y_f32)))

    print("KERNEL_OK")
</pallas_src>

<mosaic_0001>
module attributes {stable_mosaic.version = 11 : i64} {
  func.func @_conv_taps_kernel(%arg0: i32, %arg1: i32, %arg2: memref<1x4x326xbf16, #tpu.memory_space<vmem>>, %arg3: memref<9x8x4xbf16, #tpu.memory_space<vmem>>, %arg4: memref<8x1xf32, #tpu.memory_space<vmem>>, %arg5: memref<1x8x288xf32, #tpu.memory_space<vmem>>) attributes {dimension_semantics = [#tpu.dimension_semantics<parallel>, #tpu.dimension_semantics<parallel>], iteration_bounds = array<i64: 2, 1>, scalar_prefetch = 0 : i64, scratch_operands = 0 : i64, tpu.core_type = #tpu.core_type<tc>, window_params = [{transform_indices = @transform_0, window_bounds = array<i64: 1, 4, 326>}, {transform_indices = @transform_1, window_bounds = array<i64: 9, 8, 4>}, {transform_indices = @transform_2, window_bounds = array<i64: 8, 1>}, {transform_indices = @transform_3, window_bounds = array<i64: 1, 8, 288>}]} {
    %cst = arith.constant 0.000000e+00 : f32
    %0 = vector.broadcast %cst : f32 to vector<8x288xf32>
    %c0 = arith.constant 0 : index
    %c0_0 = arith.constant 0 : index
    %c0_1 = arith.constant 0 : index
    %1 = vector.load %arg2[%c0, %c0_0, %c0_1] : memref<1x4x326xbf16, #tpu.memory_space<vmem>>, vector<1x4x288xbf16>
    %2 = vector.shape_cast %1 : vector<1x4x288xbf16> to vector<4x288xbf16>
    %c0_2 = arith.constant 0 : index
    %c0_3 = arith.constant 0 : index
    %c0_4 = arith.constant 0 : index
    %3 = vector.load %arg3[%c0_2, %c0_3, %c0_4] : memref<9x8x4xbf16, #tpu.memory_space<vmem>>, vector<1x8x4xbf16>
    %4 = vector.shape_cast %3 : vector<1x8x4xbf16> to vector<8x4xbf16>
    %cst_5 = arith.constant dense<0.000000e+00> : vector<8x288xf32>
    %5 = tpu.matmul %4, %2, %cst_5 {dimension_numbers = #tpu.dot_dimension_numbers<[1], [0], [0], [1], [0, 0, 1, 1], [], []>} : vector<8x4xbf16>, vector<4x288xbf16>, vector<8x288xf32> -> vector<8x288xf32>
    %6 = arith.addf %0, %5 : vector<8x288xf32>
    %c0_6 = arith.constant 0 : index
    %c0_7 = arith.constant 0 : index
    %c1 = arith.constant 1 : index
    %7 = vector.load %arg2[%c0_6, %c0_7, %c1] : memref<1x4x326xbf16, #tpu.memory_space<vmem>>, vector<1x4x288xbf16>
    %8 = vector.shape_cast %7 : vector<1x4x288xbf16> to vector<4x288xbf16>
    %c1_8 = arith.constant 1 : index
    %c0_9 = arith.constant 0 : index
    %c0_10 = arith.constant 0 : index
    %9 = vector.load %arg3[%c1_8, %c0_9, %c0_10] : memref<9x8x4xbf16, #tpu.memory_space<vmem>>, vector<1x8x4xbf16>
    %10 = vector.shape_cast %9 : vector<1x8x4xbf16> to vector<8x4xbf16>
    %cst_11 = arith.constant dense<0.000000e+00> : vector<8x288xf32>
    %11 = tpu.matmul %10, %8, %cst_11 {dimension_numbers = #tpu.dot_dimension_numbers<[1], [0], [0], [1], [0, 0, 1, 1], [], []>} : vector<8x4xbf16>, vector<4x288xbf16>, vector<8x288xf32> -> vector<8x288xf32>
    %12 = arith.addf %6, %11 : vector<8x288xf32>
    %c0_12 = arith.constant 0 : index
    %c0_13 = arith.constant 0 : index
    %c2 = arith.constant 2 : index
    %13 = vector.load %arg2[%c0_12, %c0_13, %c2] : memref<1x4x326xbf16, #tpu.memory_space<vmem>>, vector<1x4x288xbf16>
    %14 = vector.shape_cast %13 : vector<1x4x288xbf16> to vector<4x288xbf16>
    %c2_14 = arith.constant 2 : index
    %c0_15 = arith.constant 0 : index
    %c0_16 = arith.constant 0 : index
    %15 = vector.load %arg3[%c2_14, %c0_15, %c0_16] : memref<9x8x4xbf16, #tpu.memory_space<vmem>>, vector<1x8x4xbf16>
    %16 = vector.shape_cast %15 : vector<1x8x4xbf16> to vector<8x4xbf16>
    %cst_17 = arith.constant dense<0.000000e+00> : vector<8x288xf32>
    %17 = tpu.matmul %16, %14, %cst_17 {dimension_numbers = #tpu.dot_dimension_numbers<[1], [0], [0], [1], [0, 0, 1, 1], [], []>} : vector<8x4xbf16>, vector<4x288xbf16>, vector<8x288xf32> -> vector<8x288xf32>
    %18 = arith.addf %12, %17 : vector<8x288xf32>
    %c0_18 = arith.constant 0 : index
    %c0_19 = arith.constant 0 : index
    %c18 = arith.constant 18 : index
    %19 = vector.load %arg2[%c0_18, %c0_19, %c18] : memref<1x4x326xbf16, #tpu.memory_space<vmem>>, vector<1x4x288xbf16>
    %20 = vector.shape_cast %19 : vector<1x4x288xbf16> to vector<4x288xbf16>
    %c3 = arith.constant 3 : index
    %c0_20 = arith.constant 0 : index
    %c0_21 = arith.constant 0 : index
    %21 = vector.load %arg3[%c3, %c0_20, %c0_21] : memref<9x8x4xbf16, #tpu.memory_space<vmem>>, vector<1x8x4xbf16>
    %22 = vector.shape_cast %21 : vector<1x8x4xbf16> to vector<8x4xbf16>
    %cst_22 = arith.constant dense<0.000000e+00> : vector<8x288xf32>
    %23 = tpu.matmul %22, %20, %cst_22 {dimension_numbers = #tpu.dot_dimension_numbers<[1], [0], [0], [1], [0, 0, 1, 1], [], []>} : vector<8x4xbf16>, vector<4x288xbf16>, vector<8x288xf32> -> vector<8x288xf32>
    %24 = arith.addf %18, %23 : vector<8x288xf32>
    %c0_23 = arith.constant 0 : index
    %c0_24 = arith.constant 0 : index
    %c19 = arith.constant 19 : index
    %25 = vector.load %arg2[%c0_23, %c0_24, %c19] : memref<1x4x326xbf16, #tpu.memory_space<vmem>>, vector<1x4x288xbf16>
    %26 = vector.shape_cast %25 : vector<1x4x288xbf16> to vector<4x288xbf16>
    %c4 = arith.constant 4 : index
    %c0_25 = arith.constant 0 : index
    %c0_26 = arith.constant 0 : index
    %27 = vector.load %arg3[%c4, %c0_25, %c0_26] : memref<9x8x4xbf16, #tpu.memory_space<vmem>>, vector<1x8x4xbf16>
    %28 = vector.shape_cast %27 : vector<1x8x4xbf16> to vector<8x4xbf16>
    %cst_27 = arith.constant dense<0.000000e+00> : vector<8x288xf32>
    %29 = tpu.matmul %28, %26, %cst_27 {dimension_numbers = #tpu.dot_dimension_numbers<[1], [0], [0], [1], [0, 0, 1, 1], [], []>} : vector<8x4xbf16>, vector<4x288xbf16>, vector<8x288xf32> -> vector<8x288xf32>
    %30 = arith.addf %24, %29 : vector<8x288xf32>
    %c0_28 = arith.constant 0 : index
    %c0_29 = arith.constant 0 : index
    %c20 = arith.constant 20 : index
    %31 = vector.load %arg2[%c0_28, %c0_29, %c20] : memref<1x4x326xbf16, #tpu.memory_space<vmem>>, vector<1x4x288xbf16>
    %32 = vector.shape_cast %31 : vector<1x4x288xbf16> to vector<4x288xbf16>
    %c5 = arith.constant 5 : index
    %c0_30 = arith.constant 0 : index
    %c0_31 = arith.constant 0 : index
    %33 = vector.load %arg3[%c5, %c0_30, %c0_31] : memref<9x8x4xbf16, #tpu.memory_space<vmem>>, vector<1x8x4xbf16>
    %34 = vector.shape_cast %33 : vector<1x8x4xbf16> to vector<8x4xbf16>
    %cst_32 = arith.constant dense<0.000000e+00> : vector<8x288xf32>
    %35 = tpu.matmul %34, %32, %cst_32 {dimension_numbers = #tpu.dot_dimension_numbers<[1], [0], [0], [1], [0, 0, 1, 1], [], []>} : vector<8x4xbf16>, vector<4x288xbf16>, vector<8x288xf32> -> vector<8x288xf32>
    %36 = arith.addf %30, %35 : vector<8x288xf32>
    %c0_33 = arith.constant 0 : index
    %c0_34 = arith.constant 0 : index
    %c36 = arith.constant 36 : index
    %37 = vector.load %arg2[%c0_33, %c0_34, %c36] : memref<1x4x326xbf16, #tpu.memory_space<vmem>>, vector<1x4x288xbf16>
    %38 = vector.shape_cast %37 : vector<1x4x288xbf16> to vector<4x288xbf16>
    %c6 = arith.constant 6 : index
    %c0_35 = arith.constant 0 : index
    %c0_36 = arith.constant 0 : index
    %39 = vector.load %arg3[%c6, %c0_35, %c0_36] : memref<9x8x4xbf16, #tpu.memory_space<vmem>>, vector<1x8x4xbf16>
    %40 = vector.shape_cast %39 : vector<1x8x4xbf16> to vector<8x4xbf16>
    %cst_37 = arith.constant dense<0.000000e+00> : vector<8x288xf32>
    %41 = tpu.matmul %40, %38, %cst_37 {dimension_numbers = #tpu.dot_dimension_numbers<[1], [0], [0], [1], [0, 0, 1, 1], [], []>} : vector<8x4xbf16>, vector<4x288xbf16>, vector<8x288xf32> -> vector<8x288xf32>
    %42 = arith.addf %36, %41 : vector<8x288xf32>
    %c0_38 = arith.constant 0 : index
    %c0_39 = arith.constant 0 : index
    %c37 = arith.constant 37 : index
    %43 = vector.load %arg2[%c0_38, %c0_39, %c37] : memref<1x4x326xbf16, #tpu.memory_space<vmem>>, vector<1x4x288xbf16>
    %44 = vector.shape_cast %43 : vector<1x4x288xbf16> to vector<4x288xbf16>
    %c7 = arith.constant 7 : index
    %c0_40 = arith.constant 0 : index
    %c0_41 = arith.constant 0 : index
    %45 = vector.load %arg3[%c7, %c0_40, %c0_41] : memref<9x8x4xbf16, #tpu.memory_space<vmem>>, vector<1x8x4xbf16>
    %46 = vector.shape_cast %45 : vector<1x8x4xbf16> to vector<8x4xbf16>
    %cst_42 = arith.constant dense<0.000000e+00> : vector<8x288xf32>
    %47 = tpu.matmul %46, %44, %cst_42 {dimension_numbers = #tpu.dot_dimension_numbers<[1], [0], [0], [1], [0, 0, 1, 1], [], []>} : vector<8x4xbf16>, vector<4x288xbf16>, vector<8x288xf32> -> vector<8x288xf32>
    %48 = arith.addf %42, %47 : vector<8x288xf32>
    %c0_43 = arith.constant 0 : index
    %c0_44 = arith.constant 0 : index
    %c38 = arith.constant 38 : index
    %49 = vector.load %arg2[%c0_43, %c0_44, %c38] : memref<1x4x326xbf16, #tpu.memory_space<vmem>>, vector<1x4x288xbf16>
    %50 = vector.shape_cast %49 : vector<1x4x288xbf16> to vector<4x288xbf16>
    %c8 = arith.constant 8 : index
    %c0_45 = arith.constant 0 : index
    %c0_46 = arith.constant 0 : index
    %51 = vector.load %arg3[%c8, %c0_45, %c0_46] : memref<9x8x4xbf16, #tpu.memory_space<vmem>>, vector<1x8x4xbf16>
    %52 = vector.shape_cast %51 : vector<1x8x4xbf16> to vector<8x4xbf16>
    %cst_47 = arith.constant dense<0.000000e+00> : vector<8x288xf32>
    %53 = tpu.matmul %52, %50, %cst_47 {dimension_numbers = #tpu.dot_dimension_numbers<[1], [0], [0], [1], [0, 0, 1, 1], [], []>} : vector<8x4xbf16>, vector<4x288xbf16>, vector<8x288xf32> -> vector<8x288xf32>
    %54 = arith.addf %48, %53 : vector<8x288xf32>
    %c0_48 = arith.constant 0 : index
    %c0_49 = arith.constant 0 : index
    %55 = vector.load %arg4[%c0_48, %c0_49] : memref<8x1xf32, #tpu.memory_space<vmem>>, vector<8x1xf32>
    %56 = vector.broadcast %55 : vector<8x1xf32> to vector<8x288xf32>
    %57 = arith.addf %54, %56 : vector<8x288xf32>
    %c0_50 = arith.constant 0 : index
    %c0_51 = arith.constant 0 : index
    %c0_52 = arith.constant 0 : index
    %58 = vector.load %arg5[%c0_50, %c0_51, %c0_52] : memref<1x8x288xf32, #tpu.memory_space<vmem>>, vector<1x8x288xf32>
    %59 = vector.shape_cast %58 : vector<1x8x288xf32> to vector<8x288xf32>
    %60 = vector.shape_cast %57 : vector<8x288xf32> to vector<1x8x288xf32>
    tpu.vector_store %arg5[%c0_50, %c0_51, %c0_52], %60 {strides = array<i32>} : memref<1x8x288xf32, #tpu.memory_space<vmem>>, vector<1x8x288xf32>,
    return
  }
  func.func @transform_0(%arg0: i32, %arg1: i32) -> (i32, i32, i32) {
    %c0_i32 = arith.constant 0 : i32
    %c0_i32_0 = arith.constant 0 : i32
    %c0_i32_1 = arith.constant 0 : i32
    return %arg0, %c0_i32, %c0_i32_0 : i32, i32, i32
  }
  func.func @transform_1(%arg0: i32, %arg1: i32) -> (i32, i32, i32) {
    %c0_i32 = arith.constant 0 : i32
    %c0_i32_0 = arith.constant 0 : i32
    %c0_i32_1 = arith.constant 0 : i32
    return %c0_i32, %arg1, %c0_i32_0 : i32, i32, i32
  }
  func.func @transform_2(%arg0: i32, %arg1: i32) -> (i32, i32) {
    %c0_i32 = arith.constant 0 : i32
    %c0_i32_0 = arith.constant 0 : i32
    return %arg1, %c0_i32 : i32, i32
  }
  func.func @transform_3(%arg0: i32, %arg1: i32) -> (i32, i32, i32) {
    %c0_i32 = arith.constant 0 : i32
    %c0_i32_0 = arith.constant 0 : i32
    return %arg0, %arg1, %c0_i32 : i32, i32, i32
  }
}

</mosaic_0001>

<bundles_post_ra>
// kernel: tpu_custom_call.1
= control target key start
LH: loop header
LB: loop body
LE: loop exit
PB: predicated region body
PF: predicated region fallthrough
CT: control target
= control target key end

     0   :  { %8 = vsyncpa [#allocation3], 0  ;;  %s2023_s0 = inlined_call_operand.vmem [shape: bf16[2,4,326], index: 0, kind: input, shape index: {}]   ;;  %s2024_s1 = inlined_call_operand.vmem [shape: bf16[9,8,4], index: 1, kind: input, shape index: {}]   ;;  %s2025_s2 = inlined_call_operand.vmem [shape: f32[8,1], index: 2, kind: input, shape index: {}]   ;;  %s2026_s3 = inlined_call_operand.hbm [shape: f32[2,8,288], index: 3, kind: output, shape index: {}]  }
   0x1   :  { %10 = vsyncpa [#allocation3 + $0x1], 0  ;;  %s1751_s12 = smov 0   ;;  %s1753_s13 = smov 0  }
   0x2   :  { %s1755_s14 = smov 0   ;;  %s1757_s15 = smov 0  }
   0x3   :  { %s1759_s16 = smov 0   ;;  %s1761_s17 = smov 0  }
   0x4 LB: > { %s1441_s18 = sadd.s32 4294967295, %s1716_s17   ;;  %s1442_s19 = sadd.s32 4294967294, %s1716_s17   ;;  %s1716_s17 = sphi %s1761_s17, %s16_s17   ;;  %s1712_s16 = sphi %s1759_s16, %s2033_s16   ;;  %s1708_s15 = sphi %s1757_s15, %s2032_s15   ;;  %s1704_s14 = sphi %s1755_s14, %s2031_s14   ;;  %s1700_s13 = sphi %s1753_s13, %s2030_s13   ;;  %s1696_s12 = sphi %s1751_s12, %s2029_s12  }
   0x5   : > { %s28_s20 = sadd.s32 1, %s1712_s16  ;;  %s115_s21 = sadd.s32 1, %s1704_s14 }
   0x6   : > { %p30_p0 = scmp.ge.s32.totalorder %s28_s20, 2  ;;  %p125_p1 = scmp.ne.s32.totalorder %s1704_s14, %s1700_s13 }
   0x7   : > { %p126_p2 = scmp.eq.s32.totalorder %s1441_s18, 1  ;;  %p131_p3 = scmp.ne.s32.totalorder %s1700_s13, %s1696_s12 }
   0x8   : > { %s2035_s20 = smov (%p30_p0, %s28_s20), 0  ;;  %p132_p5 = scmp.eq.s32.totalorder %s1442_s19, 1 }
   0x9   : > { %p1791_p4 = por %p126_p2, %p125_p1  ;;  %s110_s23 = ssub.s32 %s1712_s16, %s2035_s20 }
   0xa   : > { %p1447_p6 = scmp.ge.s32.totalorder %s1716_s17, 1  ;;  %p113_p7 = scmp.eq.s32.totalorder %s110_s23, 0 }
   0xb   : > { %p1798_p8 = por %p132_p5, %p131_p3  ;;  %p172_p9 = scmp.lt.s32.totalorder %s1716_s17, 3 }
   0xc   : > { %s1804_s25 = scalar_select %p113_p7, %s1704_s14, %s115_s21  }
   0xd   : > { %p173_p10 = pnand %p1447_p6, %p172_p9 }
   0xe   : > { %p204_p11 = scmp.lt.s32.totalorder (!%p173_p10), %s1708_s15, 1  ;;  %v227_v0 = vlaneseq (!%p173_p10)  ;;  %v1718_v1 = vmov (!%p173_p10), 1983009808   ;;  %v1719_v3 = vmov (!%p173_p10), 0.0   ;;  %vm1720_vm0 = vmmov (!%p173_p10), 0   ;;  %s1722_s4 = smov (!%p173_p10), 127  }
   0xf   : > { %176 = sbr.rel (%p173_p10) target bundleno = 449 (0x1c1), region = 32  ;;  %v225_v2 = vunpack.c.l.s4 (!%p173_p10), %v1718_v1  ;;  %1505 = vmatprep.subr.bf16.mxu1 (!%p173_p10), %v1719_v3  ;;  %1507 = vmatprep.mubr.msk.bf16.mxu1 (!%p173_p10), %vm1720_vm0, %v1719_v3  ;;  %v1721_v6 = vmov (!%p173_p10), 0   ;;  %s1723_s5 = smov (!%p173_p10), 126   ;;  %v1311_v48 = vld [vmem:[%s2025_s2] sm:$0xff] (!%p173_p10)  ;;  %vm252_vm1 = vcmask (!%p173_p10), 1041408   ;;  %vm245_vm2 = vcmask (!%p173_p10), 1039360  }
  0x10   : > { %v228_v4 = vshrl.u32 (!%p173_p10), %v227_v0, 7  ;;  %294 = vmatprep.mubr.bf16.mxu0 (!%p173_p10), %v1721_v6  ;;  %1629 = vset.pattern.permute.xlu0 (!%p173_p10), %v1721_v6  ;;  %s1724_s6 = smov (!%p173_p10), 110   ;;  %s1725_s7 = smov (!%p173_p10), 109   ;;  %v1449_v53 = vld [vmem:[%s2024_s1 + $0x4] sm:$0xf] (!%p173_p10)  ;;  %vm248_vm3 = vcmask (!%p173_p10), 31744  }
  0x11   : > { %v226_v5 = vunpack.c.0.s8 (!%p173_p10), %v225_v2  ;;  %s1726_s8 = smov (!%p173_p10), 108   ;;  %s1727_s9 = smov (!%p173_p10), 92   ;;  %vm462_vm4 = vcmask (!%p173_p10), 1031168   ;;  %v219_v63 = vld [vmem:[%s2024_s1] sm:$0xf] (!%p173_p10)  ;;  %vm587_vm5 = vcmask (!%p173_p10), 900096  }
  0x12   : > { %s1728_s10 = smov (!%p173_p10), 91   ;;  %s1729_s11 = smov (!%p173_p10), 90   ;;  %vm712_vm6 = vcmask (!%p173_p10), 891904   ;;  %vm837_vm7 = vcmask (!%p173_p10), 883712   ;;  %vm962_vm8 = vcmask (!%p173_p10), 752640   ;;  %vm1087_vm9 = vcmask (!%p173_p10), 744448  }
  0x13   : > { %v1813_v7 = vsub.s32 (!%p173_p10), %v226_v5, %v228_v4  ;;  %vm1212_vm10 = vcmask (!%p173_p10), 736256   ;;  %s201_s23 = sand.u32 (!%p173_p10), 1, %s1700_s13   ;;  %vm1322_vm11 = vcmask (!%p173_p10), 261120  }
  0x16   : > { %s205_s26 = scalar_select %p204_p11, %s1708_s15, 1 }
  0x18   : > { %s1560_s27 = smul.u32 6, %s205_s26 }
  0x19   : > { %s1559_s26 = smul.u32 24, %s201_s23 }
  0x1a   : > { %s1818_s30 = scalar_lea.vmem %s2023_s0, %s1560_s27  ;;  %s1561_s27 = smul.u32 384, %s1708_s15 }
  0x1b   : > { %v218_v8 = vld [vmem:[%s1818_s30] sm:$0x3f]  ;;  %s203_s28 = scalar_lea.vmem [#allocation2], %s1559_s26  ;;  %s1325_s15 = scalar_lea.sflag [#allocation3], %s201_s23 }
  0x1c   : > { %v1822_v9 = vrot.slane %v218_v8, %v1813_v7  ;;  %v223_v10 = vcombine.high %v218_v8, %v218_v8  ;;  %v436_v11 = vld [vmem:[%s1818_s30] sm:$0x3f]  ;;  %s1341_s29 = sshll.u32 %s203_s28, 4  ;;  %s1976_s29 = int_to_ptr.vmem [resolvable:$true] %s1341_s29 }
  0x1d   : > { %v447_v14 = vrot.slane %v436_v11, %v1813_v7  ;;  %v440_v15 = vcombine.high %v436_v11, %v436_v11  ;;  %v561_v17 = vld [vmem:[%s1818_s30] sm:$0x3f] }
  0x1e   : > { %239 = vrot.lane.b32.xlu0 %v1822_v9, %s1722_s4  ;;  %v1827_v12 = vrot.slane %v223_v10, %v1813_v7  ;;  %v1831_v13 = vcombine.high %v1822_v9, %v1822_v9  ;;  %v572_v19 = vrot.slane %v561_v17, %v1813_v7  ;;  %v565_v20 = vcombine.high %v561_v17, %v561_v17  ;;  %v686_v22 = vld [vmem:[%s1818_s30] sm:$0x3f]  ;;  %v1456_v10 = vld [vmem:[%s2024_s1 + $0x8] sm:$0xf] }
  0x1f   : > { %v455_v16 = vcombine.high %v447_v14, %v447_v14  ;;  %v454_v18 = vrot.slane %v440_v15, %v1813_v7  ;;  %v697_v24 = vrot.slane %v686_v22, %v1813_v7  ;;  %v690_v25 = vcombine.high %v686_v22, %v686_v22  ;;  %v811_v27 = vld [vmem:[%s1818_s30] sm:$0x3f] }
  0x20   : > { %243 = vrot.lane.b32.xlu1 %v1827_v12, %s1722_s4  ;;  %v580_v21 = vcombine.high %v572_v19, %v572_v19  ;;  %v579_v23 = vrot.slane %v565_v20, %v1813_v7  ;;  %v822_v29 = vrot.slane %v811_v27, %v1813_v7  ;;  %v815_v30 = vcombine.high %v811_v27, %v811_v27  ;;  %v936_v32 = vld [vmem:[%s1818_s30] sm:$0x3f]  ;;  %v1464_v27 = vld [vmem:[%s2024_s1 + $0x10] sm:$0xf] }
  0x21   : > { %v705_v26 = vcombine.high %v697_v24, %v697_v24  ;;  %v704_v28 = vrot.slane %v690_v25, %v1813_v7  ;;  %v947_v34 = vrot.slane %v936_v32, %v1813_v7  ;;  %v940_v35 = vcombine.high %v936_v32, %v936_v32  ;;  %v1061_v37 = vld [vmem:[%s1818_s30] sm:$0x3f] }
  0x22   : > { %241 = vrot.lane.b32.xlu0 %v1831_v13, %s1722_s4  ;;  %v830_v31 = vcombine.high %v822_v29, %v822_v29  ;;  %v829_v33 = vrot.slane %v815_v30, %v1813_v7  ;;  %v1072_v39 = vrot.slane %v1061_v37, %v1813_v7  ;;  %v1065_v40 = vcombine.high %v1061_v37, %v1061_v37  ;;  %v1186_v42 = vld [vmem:[%s1818_s30] sm:$0x3f] }
  0x23   : > { %v955_v36 = vcombine.high %v947_v34, %v947_v34  ;;  %v954_v38 = vrot.slane %v940_v35, %v1813_v7  ;;  %v1197_v44 = vrot.slane %v1186_v42, %v1813_v7  ;;  %v1190_v45 = vcombine.high %v1186_v42, %v1186_v42  ;;  %v1468_v35 = vld [vmem:[%s2024_s1 + $0x14] sm:$0xf]  ;;  %v1472_v42 = vld [vmem:[%s2024_s1 + $0x18] sm:$0xf] }
  0x24   : > { %456 = vrot.lane.b32.xlu1 %v447_v14, %s1723_s5  ;;  %v1080_v41 = vcombine.high %v1072_v39, %v1072_v39  ;;  %v1079_v43 = vrot.slane %v1065_v40, %v1813_v7  ;;  %v353_v56 = vsel %vm252_vm1, %v1827_v12, 0  ;;  %v347_v59 = vsel %vm252_vm1, %v1822_v9, 0 }
  0x25   : > { %v1205_v46 = vcombine.high %v1197_v44, %v1197_v44  ;;  %v1204_v47 = vrot.slane %v1190_v45, %v1813_v7 }
  0x26   : > { %458 = vrot.lane.b32.xlu0 %v455_v16, %s1723_s5 }
  0x28   : > { %460 = vrot.lane.b32.xlu1 %v454_v18, %s1723_s5  ;;  %s1974_s5 = scalar_lea.hbm %s2026_s3, %s1561_s27 }
  0x2a   : > { %581 = vrot.lane.b32.xlu0 %v572_v19, %s1724_s6  ;;  %v1460_v19 = vld [vmem:[%s2024_s1 + $0xc] sm:$0xf] }
  0x2c   : > { %583 = vrot.lane.b32.xlu1 %v580_v21, %s1724_s6 }
  0x2e   : > { %585 = vrot.lane.b32.xlu0 %v579_v23, %s1724_s6  ;;  %s1638_s6 = scalar_lea.vmem %s1976_s29, 384 }
  0x2f   : > { %p1639_p12 = scmp.ne.s32.totalorder %s1976_s29, %s1638_s6 }
  0x30   : > { %706 = vrot.lane.b32.xlu1 %v697_v24, %s1725_s7 }
  0x31   : > { %p1640_p13 = pnand %p1639_p12, %p1791_p4 }
  0x32   : > { %708 = vrot.lane.b32.xlu0 %v705_v26, %s1725_s7 }
  0x33   : > { %p1641_p0 = pneg %p1640_p13 }
  0x34   : > { %710 = vrot.lane.b32.xlu1 %v704_v28, %s1725_s7  ;;  %s1730_s7 = smov [#allocation2]  }
  0x36   : > { %831 = vrot.lane.b32.xlu0 %v822_v29, %s1726_s8 }
  0x38   : > { %833 = vrot.lane.b32.xlu1 %v830_v31, %s1726_s8 }
  0x3a   : > { %835 = vrot.lane.b32.xlu0 %v829_v33, %s1726_s8  ;;  %s1642_s8 = sshll.u32 %s1730_s7, 4  ;;  %s1643_s8 = int_to_ptr.vmem [resolvable:$false] %s1642_s8 }
  0x3b   : > { %p1645_p1 = scmp.lt.s32.totalorder %s1976_s29, %s1643_s8 }
  0x3c   : > { %956 = vrot.lane.b32.xlu1 %v947_v34, %s1727_s9 }
  0x3e   : > { %958 = vrot.lane.b32.xlu0 %v955_v36, %s1727_s9 }
  0x40   : > { %960 = vrot.lane.b32.xlu1 %v954_v38, %s1727_s9  ;;  %s1644_s9 = scalar_lea.vmem %s1643_s8, 768 }
  0x41   : > { %p1646_p2 = scmp.lt.s32.totalorder %s1644_s9, %s1638_s6 }
  0x42   : > { %1081 = vrot.lane.b32.xlu0 %v1072_v39, %s1728_s10 }
  0x43   : > { %p1647_p3 = por %p1646_p2, %p1645_p1 }
  0x44   : > { %1083 = vrot.lane.b32.xlu1 %v1080_v41, %s1728_s10 }
  0x45   : > { %p1648_p5 = pnand %p1647_p3, %p1641_p0 }
  0x46   : > { %1085 = vrot.lane.b32.xlu0 %v1079_v43, %s1728_s10 }
  0x48   : > { %1206 = vrot.lane.b32.xlu1 %v1197_v44, %s1729_s11 }
  0x4a   : > { %1208 = vrot.lane.b32.xlu0 %v1205_v46, %s1729_s11 }
  0x4c   : > { %1210 = vrot.lane.b32.xlu1 %v1204_v47, %s1729_s11 }
  0x4e   : > { %1314 = vperm.xlu0 %1629, %v1311_v48  }
  0x90   : > { %v240_v49 = vpop.permute.xlu0 %239 }
  0x92   : > { %v244_v50 = vpop.permute.xlu1 %243 }
  0x93   : > { %v260_v51 = vsel %vm252_vm1, %v244_v50, 0 }
  0x94   : > { %v242_v52 = vpop.permute.xlu0 %241  ;;  %1506 = vmatpush3.bf16.msra.mxu1 %v260_v51 }
  0x95   : > { %v247_v54 = vsel %vm245_vm2, %v242_v52, %v244_v50  ;;  %v246_v55 = vsel %vm245_vm2, %v240_v49, %v242_v52  ;;  %1511 = vmatprep.subr.bf16.mxu1 %v1719_v3  ;;  %v1476_v49 = vld [vmem:[%s2024_s1 + $0x1c] sm:$0xf] }
  0x96   : > { %1450 = vmatprep.subr.msk.bf16.mxu0 %vm252_vm1, %v247_v54  ;;  %v254_v57 = vsel %vm252_vm1, %v246_v55, 0  ;;  %v457_v58 = vpop.permute.xlu1 %456 }
  0x97   : > { %263 = vmatpush1.bf16.msra.mxu0 %v254_v57  ;;  %1508 = vmatmul.mubr.msk.bf16.vlgmr.msra.gmra.mrb[0].mxu1 %vm248_vm3, %v1449_v53 }
  0x98   : > { %1453 = vmatprep.subr.msk.bf16.mxu0 %vm252_vm1, %v1831_v13  ;;  %v459_v60 = vpop.permute.xlu0 %458  ;;  %1512 = vmatpush3.bf16.msra.mxu1 %v353_v56 }
  0x99   : > { %1513 = vmatprep.mubr.msk.bf16.mxu1 %vm1720_vm0, %v1719_v3  ;;  %1517 = vmatprep.subr.bf16.mxu1 %v1719_v3  ;;  %v463_v1 = vsel %vm462_vm4, %v457_v58, %v459_v60 }
  0x9a   : > { %1451 = vmatmul.mubr.msk.bf16.vlgmr.msra.gmra.mrb[0].mxu0 %vm248_vm3, %v1449_v53  ;;  %v461_v61 = vpop.permute.xlu1 %460  ;;  %v469_v5 = vsel %vm252_vm1, %v463_v1, 0  ;;  %v1480_v53 = vld [vmem:[%s2024_s1 + $0x20] sm:$0xf] }
  0x9b   : > { %356 = vmatpush1.bf16.msra.mxu0 %v347_v59  ;;  %v464_v62 = vsel %vm462_vm4, %v459_v60, %v461_v61  ;;  %387 = vmatprep.mubr.bf16.mxu0 %v1721_v6  ;;  %v475_v2 = vsel %vm252_vm1, %v461_v61, 0 }
  0x9c   : > { %1457 = vmatprep.subr.msk.bf16.mxu0 %vm252_vm1, %v464_v62  ;;  %v582_v0 = vpop.permute.xlu0 %581 }
  0x9e   : > { %v584_v4 = vpop.permute.xlu1 %583 }
  0x9f   : > { %1514 = vmatmul.mubr.msk.bf16.vlgmr.msra.gmra.mrb[4].mxu1 %vm248_vm3, %v219_v63  ;;  %v588_v12 = vsel %vm587_vm5, %v582_v0, %v584_v4 }
  0xa0   : > { %1518 = vmatpush3.bf16.msra.mxu1 %v475_v2  ;;  %1519 = vmatprep.mubr.msk.bf16.mxu1 %vm1720_vm0, %v1719_v3  ;;  %v586_v7 = vpop.permute.xlu0 %585  ;;  %v594_v15 = vsel %vm252_vm1, %v588_v12, 0 }
  0xa1   : > { %v589_v8 = vsel %vm587_vm5, %v584_v4, %v586_v7  ;;  %1523 = vmatprep.subr.bf16.mxu1 %v1719_v3  ;;  %v600_v13 = vsel %vm252_vm1, %v586_v7, 0 }
  0xa2   : > { %1454 = vmatmul.mubr.msk.bf16.vlgmr.msra.gmra.mrb[4].mxu0 %vm248_vm3, %v219_v63  ;;  %v707_v9 = vpop.permute.xlu1 %706 }
  0xa3   : > { %478 = vmatpush1.bf16.msra.mxu0 %v469_v5  ;;  %509 = vmatprep.mubr.bf16.mxu0 %v1721_v6 }
  0xa4   : > { %1461 = vmatprep.subr.msk.bf16.mxu0 %vm252_vm1, %v589_v8  ;;  %v709_v11 = vpop.permute.xlu0 %708 }
  0xa5   : > { %v713_v20 = vsel %vm712_vm6, %v707_v9, %v709_v11 }
  0xa6   : > { %v711_v14 = vpop.permute.xlu1 %710  ;;  %v719_v23 = vsel %vm252_vm1, %v713_v20, 0 }
  0xa7   : > { %1520 = vmatmul.mubr.msk.bf16.vlgmr.msra.gmra.mrb[8].mxu1 %vm248_vm3, %v1456_v10  ;;  %v714_v17 = vsel %vm712_vm6, %v709_v11, %v711_v14  ;;  %v725_v21 = vsel %vm252_vm1, %v711_v14, 0 }
  0xa8   : > { %1524 = vmatpush3.bf16.msra.mxu1 %v600_v13  ;;  %1525 = vmatprep.mubr.msk.bf16.mxu1 %vm1720_vm0, %v1719_v3  ;;  %v832_v16 = vpop.permute.xlu0 %831 }
  0xa9   : > { %1529 = vmatprep.subr.bf16.mxu1 %v1719_v3 }
  0xaa   : > { %1458 = vmatmul.mubr.msk.bf16.vlgmr.msra.gmra.mrb[8].mxu0 %vm248_vm3, %v1456_v10  ;;  %v834_v18 = vpop.permute.xlu1 %833 }
  0xab   : > { %603 = vmatpush1.bf16.msra.mxu0 %v594_v15  ;;  %634 = vmatprep.mubr.bf16.mxu0 %v1721_v6  ;;  %v838_v28 = vsel %vm837_vm7, %v832_v16, %v834_v18 }
  0xac   : > { %1465 = vmatprep.subr.msk.bf16.mxu0 %vm252_vm1, %v714_v17  ;;  %v836_v22 = vpop.permute.xlu0 %835  ;;  %v844_v31 = vsel %vm252_vm1, %v838_v28, 0 }
  0xad   : > { %v839_v25 = vsel %vm837_vm7, %v834_v18, %v836_v22  ;;  %v850_v29 = vsel %vm252_vm1, %v836_v22, 0 }
  0xae   : > { %v957_v24 = vpop.permute.xlu1 %956 }
  0xaf   : > { %1526 = vmatmul.mubr.msk.bf16.vlgmr.msra.gmra.mrb[12].mxu1 %vm248_vm3, %v1460_v19 }
  0xb0   : > { %1530 = vmatpush3.bf16.msra.mxu1 %v725_v21  ;;  %1531 = vmatprep.mubr.msk.bf16.mxu1 %vm1720_vm0, %v1719_v3  ;;  %v959_v26 = vpop.permute.xlu0 %958 }
  0xb1   : > { %1535 = vmatprep.subr.bf16.mxu1 %v1719_v3  ;;  %v963_v36 = vsel %vm962_vm8, %v957_v24, %v959_v26 }
  0xb2   : > { %1462 = vmatmul.mubr.msk.bf16.vlgmr.msra.gmra.mrb[12].mxu0 %vm248_vm3, %v1460_v19  ;;  %v961_v30 = vpop.permute.xlu1 %960  ;;  %v969_v39 = vsel %vm252_vm1, %v963_v36, 0 }
  0xb3   : > { %728 = vmatpush1.bf16.msra.mxu0 %v719_v23  ;;  %759 = vmatprep.mubr.bf16.mxu0 %v1721_v6  ;;  %v964_v33 = vsel %vm962_vm8, %v959_v26, %v961_v30  ;;  %v975_v37 = vsel %vm252_vm1, %v961_v30, 0 }
  0xb4   : > { %1469 = vmatprep.subr.msk.bf16.mxu0 %vm252_vm1, %v839_v25  ;;  %v1082_v32 = vpop.permute.xlu0 %1081 }
  0xb6   : > { %v1084_v34 = vpop.permute.xlu1 %1083 }
  0xb7   : > { %1532 = vmatmul.mubr.msk.bf16.vlgmr.msra.gmra.mrb[16].mxu1 %vm248_vm3, %v1464_v27  ;;  %v1088_v43 = vsel %vm1087_vm9, %v1082_v32, %v1084_v34 }
  0xb8   : > { %1536 = vmatpush3.bf16.msra.mxu1 %v850_v29  ;;  %1537 = vmatprep.mubr.msk.bf16.mxu1 %vm1720_vm0, %v1719_v3  ;;  %v1086_v38 = vpop.permute.xlu0 %1085  ;;  %v1094_v47 = vsel %vm252_vm1, %v1088_v43, 0 }
  0xb9   : > { %1541 = vmatprep.subr.bf16.mxu1 %v1719_v3  ;;  %v1089_v41 = vsel %vm1087_vm9, %v1084_v34, %v1086_v38  ;;  %v1100_v44 = vsel %vm252_vm1, %v1086_v38, 0 }
  0xba   : > { %1466 = vmatmul.mubr.msk.bf16.vlgmr.msra.gmra.mrb[16].mxu0 %vm248_vm3, %v1464_v27  ;;  %v1207_v40 = vpop.permute.xlu1 %1206 }
  0xbb   : > { %853 = vmatpush1.bf16.msra.mxu0 %v844_v31  ;;  %884 = vmatprep.mubr.bf16.mxu0 %v1721_v6 }
  0xbc   : > { %1473 = vmatprep.subr.msk.bf16.mxu0 %vm252_vm1, %v964_v33  ;;  %v1209_v45 = vpop.permute.xlu0 %1208 }
  0xbd   : > { %v1213_v50 = vsel %vm1212_vm10, %v1207_v40, %v1209_v45 }
  0xbe   : > { %v1211_v46 = vpop.permute.xlu1 %1210  ;;  %v1219_v52 = vsel %vm252_vm1, %v1213_v50, 0 }
  0xbf   : > { %1538 = vmatmul.mubr.msk.bf16.vlgmr.msra.gmra.mrb[20].mxu1 %vm248_vm3, %v1468_v35  ;;  %v1214_v48 = vsel %vm1212_vm10, %v1209_v45, %v1211_v46  ;;  %v1225_v51 = vsel %vm252_vm1, %v1211_v46, 0 }
  0xc0   : > { %1542 = vmatpush3.bf16.msra.mxu1 %v975_v37  ;;  %1543 = vmatprep.mubr.msk.bf16.mxu1 %vm1720_vm0, %v1719_v3 }
  0xc1   : > { %1547 = vmatprep.subr.bf16.mxu1 %v1719_v3 }
  0xc2   : > { %1470 = vmatmul.mubr.msk.bf16.vlgmr.msra.gmra.mrb[20].mxu0 %vm248_vm3, %v1468_v35 }
  0xc3   : > { %978 = vmatpush1.bf16.msra.mxu0 %v969_v39  ;;  %1009 = vmatprep.mubr.bf16.mxu0 %v1721_v6 }
  0xc4   : > { %1477 = vmatprep.subr.msk.bf16.mxu0 %vm252_vm1, %v1089_v41 }
  0xc7   : > { %1544 = vmatmul.mubr.msk.bf16.vlgmr.msra.gmra.mrb[24].mxu1 %vm248_vm3, %v1472_v42 }
  0xc8   : > { %1548 = vmatpush3.bf16.msra.mxu1 %v1100_v44  ;;  %1549 = vmatprep.mubr.msk.bf16.mxu1 %vm1720_vm0, %v1719_v3 }
  0xc9   : > { %1553 = vmatprep.subr.bf16.mxu1 %v1719_v3 }
  0xca   : > { %1474 = vmatmul.mubr.msk.bf16.vlgmr.msra.gmra.mrb[24].mxu0 %vm248_vm3, %v1472_v42 }
  0xcb   : > { %1103 = vmatpush1.bf16.msra.mxu0 %v1094_v47  ;;  %1134 = vmatprep.mubr.bf16.mxu0 %v1721_v6 }
  0xcc   : > { %1481 = vmatprep.subr.msk.bf16.mxu0 %vm252_vm1, %v1214_v48 }
  0xcf   : > { %1550 = vmatmul.mubr.msk.bf16.vlgmr.msra.gmra.mrb[28].mxu1 %vm248_vm3, %v1476_v49 }
  0xd0   : > { %1554 = vmatpush3.bf16.msra.mxu1 %v1225_v51  ;;  %1555 = vmatprep.mubr.msk.bf16.mxu1 %vm1720_vm0, %v1719_v3 }
  0xd2   : > { %1478 = vmatmul.mubr.msk.bf16.vlgmr.msra.gmra.mrb[28].mxu0 %vm248_vm3, %v1476_v49 }
  0xd3   : > { %1228 = vmatpush1.bf16.msra.mxu0 %v1219_v52  ;;  %1259 = vmatprep.mubr.bf16.mxu0 %v1721_v6 }
  0xd7   : > { %1556 = vmatmul.mubr.msk.bf16.vlgmr.msra.gmra.mrb[32].mxu1 %vm248_vm3, %v1480_v53 }
  0xda   : > { %1482 = vmatmul.mubr.msk.bf16.vlgmr.msra.gmra.mrb[32].mxu0 %vm248_vm3, %v1480_v53 }
 0x16a   : > { %v337_v54 = vpop.f32.mrb[0].mxu1 }
 0x16b   : > { %v1509_v55 = vpop.f32.mrb[1].mxu1 }
 0x16c   : > { %v340_v56 = vpop.f32.mrb[2].mxu1 }
 0x16d   : > { %v296_v57 = vpop.f32.mrb[0].mxu0  ;;  %v1510_v58 = vpop.f32.mrb[3].mxu1 }
 0x16e   : > { %v298_v59 = vpop.f32.mrb[1].mxu0 }
 0x16f   : > { %v300_v3 = vpop.f32.mrb[2].mxu0 }
 0x170   : > { %v301_v60 = vpop.f32.mrb[3].mxu0 }
 0x172   : > { %v430_v61 = vpop.f32.mrb[4].mxu1 }
 0x173   : > { %v431_v62 = vadd.f32 %v430_v61, %v337_v54  ;;  %v1515_v63 = vpop.f32.mrb[5].mxu1 }
 0x174   : > { %v433_v6 = vpop.f32.mrb[6].mxu1 }
 0x175   : > { %v389_v0 = vpop.f32.mrb[4].mxu0  ;;  %v1516_v1 = vpop.f32.mrb[7].mxu1 }
 0x176   : > { %v390_v2 = vadd.f32 %v389_v0, %v296_v57  ;;  %v391_v4 = vpop.f32.mrb[5].mxu0 }
 0x177   : > { %v392_v5 = vadd.f32 %v391_v4, %v298_v59  ;;  %v393_v7 = vpop.f32.mrb[6].mxu0 }
 0x178   : > { %v394_v8 = vpop.f32.mrb[7].mxu0 }
 0x17a   : > { %v552_v9 = vpop.f32.mrb[8].mxu1 }
 0x17b   : > { %v560_v10 = vadd.f32 %v552_v9, %v431_v62  ;;  %v1521_v11 = vpop.f32.mrb[9].mxu1 }
 0x17c   : > { %v555_v12 = vpop.f32.mrb[10].mxu1 }
 0x17d   : > { %v511_v13 = vpop.f32.mrb[8].mxu0  ;;  %v1522_v14 = vpop.f32.mrb[11].mxu1 }
 0x17e   : > { %v558_v15 = vadd.f32 %v511_v13, %v390_v2  ;;  %v513_v16 = vpop.f32.mrb[9].mxu0  ;;  %v1315_v12 = vpop.permute.xlu0 %1314 }
 0x17f   : > { %v559_v17 = vadd.f32 %v513_v16, %v392_v5  ;;  %v515_v18 = vpop.f32.mrb[10].mxu0 }
 0x180   : > { %v516_v19 = vpop.f32.mrb[11].mxu0 }
 0x182   : > { %v677_v20 = vpop.f32.mrb[12].mxu1 }
 0x183   : > { %v685_v21 = vadd.f32 %v677_v20, %v560_v10  ;;  %v1527_v22 = vpop.f32.mrb[13].mxu1 }
 0x184   : > { %v680_v23 = vpop.f32.mrb[14].mxu1 }
 0x185   : > { %v636_v24 = vpop.f32.mrb[12].mxu0  ;;  %v1528_v25 = vpop.f32.mrb[15].mxu1 }
 0x186   : > { %v683_v26 = vadd.f32 %v636_v24, %v558_v15  ;;  %v638_v27 = vpop.f32.mrb[13].mxu0 }
 0x187   : > { %v684_v28 = vadd.f32 %v638_v27, %v559_v17  ;;  %v640_v29 = vpop.f32.mrb[14].mxu0 }
 0x188   : > { %v641_v30 = vpop.f32.mrb[15].mxu0 }
 0x18a   : > { %v802_v31 = vpop.f32.mrb[16].mxu1 }
 0x18b   : > { %v810_v32 = vadd.f32 %v802_v31, %v685_v21  ;;  %v1533_v33 = vpop.f32.mrb[17].mxu1 }
 0x18c   : > { %v805_v34 = vpop.f32.mrb[18].mxu1 }
 0x18d   : > { %v761_v35 = vpop.f32.mrb[16].mxu0  ;;  %v1534_v36 = vpop.f32.mrb[19].mxu1 }
 0x18e   : > { %v808_v37 = vadd.f32 %v761_v35, %v683_v26  ;;  %v763_v38 = vpop.f32.mrb[17].mxu0 }
 0x18f   : > { %v809_v39 = vadd.f32 %v763_v38, %v684_v28  ;;  %v765_v40 = vpop.f32.mrb[18].mxu0 }
 0x190   : > { %v766_v41 = vpop.f32.mrb[19].mxu0 }
 0x192   : > { %v927_v42 = vpop.f32.mrb[20].mxu1 }
 0x193   : > { %v935_v43 = vadd.f32 %v927_v42, %v810_v32  ;;  %v1539_v44 = vpop.f32.mrb[21].mxu1 }
 0x194   : > { %v930_v45 = vpop.f32.mrb[22].mxu1 }
 0x195   : > { %v886_v46 = vpop.f32.mrb[20].mxu0  ;;  %v1540_v47 = vpop.f32.mrb[23].mxu1 }
 0x196   : > { %v933_v48 = vadd.f32 %v886_v46, %v808_v37  ;;  %v888_v49 = vpop.f32.mrb[21].mxu0 }
 0x197   : > { %v934_v50 = vadd.f32 %v888_v49, %v809_v39  ;;  %v890_v51 = vpop.f32.mrb[22].mxu0 }
 0x198   : > { %v891_v52 = vpop.f32.mrb[23].mxu0 }
 0x19a   : > { %v1052_v53 = vpop.f32.mrb[24].mxu1 }
 0x19b   : > { %v1060_v54 = vadd.f32 %v1052_v53, %v935_v43  ;;  %v1545_v55 = vpop.f32.mrb[25].mxu1 }
 0x19c   : > { %v1055_v56 = vpop.f32.mrb[26].mxu1 }
 0x19d   : > { %v1011_v57 = vpop.f32.mrb[24].mxu0  ;;  %v1546_v58 = vpop.f32.mrb[27].mxu1 }
 0x19e   : > { %v1058_v59 = vadd.f32 %v1011_v57, %v933_v48  ;;  %v1013_v3 = vpop.f32.mrb[25].mxu0 }
 0x19f   : > { %v1059_v60 = vadd.f32 %v1013_v3, %v934_v50  ;;  %v1015_v61 = vpop.f32.mrb[26].mxu0 }
 0x1a0   : > { %v1016_v62 = vpop.f32.mrb[27].mxu0 }
 0x1a2   : > { %v1177_v63 = vpop.f32.mrb[28].mxu1 }
 0x1a3   : > { %v1185_v6 = vadd.f32 %v1177_v63, %v1060_v54  ;;  %v1551_v0 = vpop.f32.mrb[29].mxu1 }
 0x1a4   : > { %v1180_v1 = vpop.f32.mrb[30].mxu1 }
 0x1a5   : > { %v1136_v2 = vpop.f32.mrb[28].mxu0  ;;  %v1552_v4 = vpop.f32.mrb[31].mxu1 }
 0x1a6   : > { %v1183_v5 = vadd.f32 %v1136_v2, %v1058_v59  ;;  %v1138_v7 = vpop.f32.mrb[29].mxu0 }
 0x1a7   : > { %v1184_v8 = vadd.f32 %v1138_v7, %v1059_v60  ;;  %v1140_v9 = vpop.f32.mrb[30].mxu0 }
 0x1a8   : > { %v1141_v10 = vpop.f32.mrb[31].mxu0 }
 0x1aa   : > { %v1302_v11 = vpop.f32.mrb[32].mxu1 }
 0x1ab   : > { %v1310_v13 = vadd.f32 %v1302_v11, %v1185_v6  ;;  %v1557_v14 = vpop.f32.mrb[33].mxu1 }
 0x1ac   : > { %v1305_v15 = vpop.f32.mrb[34].mxu1 }
 0x1ad   : > { %v1319_v16 = vadd.f32 %v1315_v12, %v1310_v13  ;;  %v1261_v17 = vpop.f32.mrb[32].mxu0  ;;  %v1558_v18 = vpop.f32.mrb[35].mxu1 }
 0x1ae   : > { %v1308_v19 = vadd.f32 %v1261_v17, %v1183_v5  ;;  %v1263_v20 = vpop.f32.mrb[33].mxu0 }
 0x1af   : > { %1323 = vst.msk [vmem:[%s203_s28 + $0x10] sm:$0xff] %vm1322_vm11, %v1319_v16  ;;  %v1309_v21 = vadd.f32 %v1263_v20, %v1184_v8  ;;  %v1265_v22 = vpop.f32.mrb[34].mxu0 }
 0x1b0   : > { %v1317_v23 = vadd.f32 %v1315_v12, %v1308_v19  ;;  %v1266_v24 = vpop.f32.mrb[35].mxu0 }
 0x1b1   : > { %v1318_v25 = vadd.f32 %v1315_v12, %v1309_v21 }
 0x1b2   : > { %1320 = vst [vmem:[%s203_s28] sm:$0xff] %v1317_v23 }
 0x1b3   : > { %1321 = vst [vmem:[%s203_s28 + $0x8] sm:$0xff] %v1318_v25 }
 0x1b4   : > { %1651 = shalt.err (!%p1648_p5)
}
 0x1b5   : > { %s1652_s10 = scalar_lea.hbm %s1974_s5, 384  ;;  %s1656_s19 = scalar_lea.hbm %s2026_s3, 768 }
 0x1b6   : > { %p1653_p6 = scmp.ne.s32.totalorder %s1974_s5, %s1652_s10  ;;  %p1657_p10 = scmp.lt.u32.totalorder %s1974_s5, %s2026_s3 }
 0x1b7   : > { %p1658_p11 = scmp.lt.u32.totalorder %s1656_s19, %s1652_s10  ;;  %p1660_p13 = scmp.lt.u32.totalorder %s1652_s10, %s1974_s5 }
 0x1b8   : > { %p1654_p7 = pnand %p1653_p6, %p1791_p4 }
 0x1b9   : > { %p1659_p12 = por %p1658_p11, %p1657_p10 }
 0x1ba   : > { %p1655_p9 = pneg %p1654_p7 }
 0x1bb   : > { %p1661_p0 = por %p1660_p13, %p1659_p12 }
 0x1bd   : > { %p1662_p1 = pnand %p1661_p0, %p1655_p9 }
 0x1bf   : > { %1665 = shalt.err (!%p1662_p1)
}
 0x1c0   : > { %1562 = dma.vmem_to_hbm [thread:$0]  (%p1791_p4), %s1976_s29, 384, %s1974_s5, %s1325_s15  }
 0x1c1 PF: > { %p1568_p2 = scmp.ge.s32.totalorder %s1716_s17, 2  ;;  %s1353_s26 = sand.u32 1, %s1696_s12  }
 0x1c2   : > { %s1354_s27 = scalar_lea.sflag [#allocation3], %s1353_s26 }
 0x1c3   : > { %p1565_p3 = pnand %p1568_p2, %p1798_p8 }
 0x1c5   : > { %1691 = dma.done.wait (!%p1565_p3), %s1354_s27, 384  }
 0x1c6   : > { %1693 = vsyncadd (!%p1565_p3), %s1354_s27, 4294966912  ;;  %s16_s17 = sadd.s32 1, %s1716_s17   ;;  %s2029_s12 = smov %s1700_s13 }
 0x1c7   : > { %p13_p5 = scmp.ge.s32.totalorder %s16_s17, 4   ;;  %s2030_s13 = smov %s1704_s14 }
 0x1c8   : > { %s2031_s14 = smov %s1804_s25  ;;  %s2032_s15 = smov %s1712_s16 }
 0x1c9   : > { %s2033_s16 = smov %s2035_s20  ;;  %15 = sbr.rel (!%p13_p5) target bundleno = 4 (0x4), region = 81 }
 0x1d0   :  { %1359 = vsyncpa [#allocation3], 1 }
 0x1d1   :  { %1361 = vsyncpa [#allocation3 + $0x1], 1 }

</bundles_post_ra>
